<compile_context>
chip_gen: v6e
topology: v6e:2x2x1
jax: 0.10.0
libtpu: 0.0.40
codegen_flags: <defaults>
</compile_context>

<pallas_src>
import functools

import jax
import jax.numpy as jnp
from jax.experimental import pallas as pl
from jax.experimental.pallas import tpu as pltpu


def _round_up(x, m):
    return (x + m - 1) // m * m


def _prenorm_kernel(x_ref, gamma_ref, beta_ref, w_ref, b_ref, o_ref, *,
                    eps, d_model):
    # x_ref:     (tile_m, d_pad)   rows to normalize (zero-padded lanes beyond d_model)
    # gamma_ref: (1, d_pad)        LayerNorm weight (zero-padded)
    # beta_ref:  (1, d_pad)        LayerNorm bias   (zero-padded)
    # w_ref:     (d_pad, tile_n)   Linear weight tile, bf16, (in_dim x out_dim)
    # b_ref:     (1, tile_n)       Linear bias tile
    x = x_ref[...].astype(jnp.float32)
    d_pad = x.shape[-1]
    inv_d = 1.0 / d_model

    # --- LayerNorm over the (true) last axis, PyTorch semantics ------------
    # Padded lanes hold zeros, so the sum over the padded axis equals the sum
    # over the real lanes; divide by the true d_model.
    mean = jnp.sum(x, axis=-1, keepdims=True) * inv_d
    xc = x - mean
    if d_pad != d_model:
        lane = jax.lax.broadcasted_iota(jnp.int32, x.shape, dimension=1)
        xc = jnp.where(lane < d_model, xc, 0.0)
    var = jnp.sum(xc * xc, axis=-1, keepdims=True) * inv_d   # biased variance
    inv = jax.lax.rsqrt(var + eps)
    xn = xc * inv
    # gamma/beta are zero-padded, so padded lanes of xn become exactly 0 and
    # contribute nothing to the matmul.
    xn = xn * gamma_ref[...].astype(jnp.float32) + beta_ref[...].astype(jnp.float32)

    # --- fn: Linear(dim, dim) on the MXU (bf16 operands, f32 accumulate) ---
    y = jnp.dot(xn.astype(w_ref.dtype), w_ref[...],
                preferred_element_type=jnp.float32)
    y = y + b_ref[...].astype(jnp.float32)

    o_ref[...] = y.astype(o_ref.dtype)


def prenorm_linear(x, gamma, beta, w, b, *, eps=1e-5, tile_m=256, tile_n=256,
                   matmul_dtype=jnp.bfloat16):
    """fn(norm(x)) with norm=LayerNorm(dim), fn=Linear(dim, dim).

    x: (batch, seq, dim) float32
    gamma, beta: (dim,)            LayerNorm affine params
    w: (dim, dim)                  Linear weight stored as (in_dim, out_dim) = W_pt.T
    b: (dim,)                      Linear bias
    """
    B, S, D = x.shape
    rows = B * S

    # Lane-dense padding of the feature / output dims to multiples of 128.
    d_pad = _round_up(D, 128)
    n_pad = _round_up(D, 128)

    # Clamp tiles to the (padded) problem so toy shapes don't over-pad.
    tile_m = min(tile_m, _round_up(rows, 8))
    tile_n = min(tile_n, n_pad)
    rows_pad = _round_up(rows, tile_m)

    x2 = x.reshape(rows, D)
    if rows_pad != rows or d_pad != D:
        x2 = jnp.pad(x2, ((0, rows_pad - rows), (0, d_pad - D)))
    gamma2 = jnp.pad(gamma, (0, d_pad - D)).reshape(1, d_pad).astype(jnp.float32)
    beta2 = jnp.pad(beta, (0, d_pad - D)).reshape(1, d_pad).astype(jnp.float32)
    w2 = jnp.pad(w, ((0, d_pad - D), (0, n_pad - D))).astype(matmul_dtype)
    b2 = jnp.pad(b, (0, n_pad - D)).reshape(1, n_pad).astype(jnp.float32)

    grid = (rows_pad // tile_m, n_pad // tile_n)

    out = pl.pallas_call(
        functools.partial(_prenorm_kernel, eps=eps, d_model=D),
        out_shape=jax.ShapeDtypeStruct((rows_pad, n_pad), x.dtype),
        grid_spec=pltpu.PrefetchScalarGridSpec(
            num_scalar_prefetch=0,
            grid=grid,
            in_specs=[
                pl.BlockSpec((tile_m, d_pad), lambda i, j: (i, 0)),   # x rows
                pl.BlockSpec((1, d_pad), lambda i, j: (0, 0)),        # gamma
                pl.BlockSpec((1, d_pad), lambda i, j: (0, 0)),        # beta
                pl.BlockSpec((d_pad, tile_n), lambda i, j: (0, j)),   # W tile
                pl.BlockSpec((1, tile_n), lambda i, j: (0, j)),       # bias tile
            ],
            out_specs=pl.BlockSpec((tile_m, tile_n), lambda i, j: (i, j)),
        ),
        compiler_params=pltpu.CompilerParams(
            dimension_semantics=("parallel", "parallel"),
        ),
    )(x2, gamma2, beta2, w2, b2)

    return out[:rows, :D].reshape(B, S, D)


def _reference(x, gamma, beta, w, b, eps=1e-5):
    mean = jnp.mean(x, axis=-1, keepdims=True)
    var = jnp.mean((x - mean) ** 2, axis=-1, keepdims=True)
    xn = (x - mean) / jnp.sqrt(var + eps)
    xn = xn * gamma + beta
    return jnp.einsum("bsd,de->bse", xn, w) + b


if __name__ == "__main__":
    key = jax.random.PRNGKey(0)
    B, S, D = 2, 8, 32  # batch, seq, hidden

    k_x, k_g, k_b, k_w, k_lb = jax.random.split(key, 5)
    x = jax.random.normal(k_x, (B, S, D), dtype=jnp.float32)

    # LayerNorm params (perturbed so the affine path is exercised).
    gamma = 1.0 + 0.1 * jax.random.normal(k_g, (D,), dtype=jnp.float32)
    beta = 0.1 * jax.random.normal(k_b, (D,), dtype=jnp.float32)

    # Linear(dim, dim) params; w stored as (in_dim, out_dim).
    w = jax.random.normal(k_w, (D, D), dtype=jnp.float32) / jnp.sqrt(D)
    b = 0.1 * jax.random.normal(k_lb, (D,), dtype=jnp.float32)

    out = prenorm_linear(x, gamma, beta, w, b)
    out = jax.block_until_ready(out)

    ref = _reference(x, gamma, beta, w, b)
    assert out.shape == (B, S, D)
    max_err = jnp.max(jnp.abs(out - ref))
    # bf16 MXU operands with f32 accumulation -> loosened tolerance.
    assert jnp.allclose(out, ref, atol=3e-2, rtol=3e-2), (
        f"mismatch vs reference (max abs err = {max_err})")

    print("KERNEL_OK")
</pallas_src>

<mosaic_0001>
module attributes {stable_mosaic.version = 11 : i64} {
  func.func @_prenorm_kernel(%arg0: i32, %arg1: i32, %arg2: memref<16x128xf32, #tpu.memory_space<vmem>>, %arg3: memref<1x128xf32, #tpu.memory_space<vmem>>, %arg4: memref<1x128xf32, #tpu.memory_space<vmem>>, %arg5: memref<128x128xbf16, #tpu.memory_space<vmem>>, %arg6: memref<1x128xf32, #tpu.memory_space<vmem>>, %arg7: memref<16x128xf32, #tpu.memory_space<vmem>>) attributes {dimension_semantics = [#tpu.dimension_semantics<parallel>, #tpu.dimension_semantics<parallel>], iteration_bounds = array<i64: 1, 1>, scalar_prefetch = 0 : i64, scratch_operands = 0 : i64, tpu.core_type = #tpu.core_type<tc>, window_params = [{transform_indices = @transform_0, window_bounds = array<i64: 16, 128>}, {pipeline_mode = #tpu.pipeline_mode<synchronous>, transform_indices = @transform_1, window_bounds = array<i64: 1, 128>}, {pipeline_mode = #tpu.pipeline_mode<synchronous>, transform_indices = @transform_2, window_bounds = array<i64: 1, 128>}, {transform_indices = @transform_3, window_bounds = array<i64: 128, 128>}, {transform_indices = @transform_4, window_bounds = array<i64: 1, 128>}, {transform_indices = @transform_5, window_bounds = array<i64: 16, 128>}]} {
    %c0 = arith.constant 0 : index
    %c0_0 = arith.constant 0 : index
    %0 = vector.load %arg2[%c0, %c0_0] : memref<16x128xf32, #tpu.memory_space<vmem>>, vector<16x128xf32>
    %cst = arith.constant dense<0.000000e+00> : vector<16xf32>
    %1 = vector.multi_reduction <add>, %0, %cst [1] : vector<16x128xf32> to vector<16xf32>
    %2 = vector.shape_cast %1 : vector<16xf32> to vector<16x1xf32>
    %cst_1 = arith.constant 3.125000e-02 : f32
    %3 = vector.broadcast %cst_1 : f32 to vector<16x1xf32>
    %4 = arith.mulf %2, %3 : vector<16x1xf32>
    %5 = vector.broadcast %4 : vector<16x1xf32> to vector<16x128xf32>
    %6 = arith.subf %0, %5 : vector<16x128xf32>
    %7 = tpu.iota {dimensions = array<i32: 1>} : vector<16x128xi32>
    %c32_i32 = arith.constant 32 : i32
    %8 = vector.broadcast %c32_i32 : i32 to vector<16x128xi32>
    %9 = arith.cmpi slt, %7, %8 : vector<16x128xi32>
    %cst_2 = arith.constant 0.000000e+00 : f32
    %10 = vector.broadcast %cst_2 : f32 to vector<16x128xf32>
    %11 = arith.select %9, %6, %10 : vector<16x128xi1>, vector<16x128xf32>
    %12 = arith.mulf %11, %11 : vector<16x128xf32>
    %cst_3 = arith.constant dense<0.000000e+00> : vector<16xf32>
    %13 = vector.multi_reduction <add>, %12, %cst_3 [1] : vector<16x128xf32> to vector<16xf32>
    %14 = vector.shape_cast %13 : vector<16xf32> to vector<16x1xf32>
    %cst_4 = arith.constant 3.125000e-02 : f32
    %15 = vector.broadcast %cst_4 : f32 to vector<16x1xf32>
    %16 = arith.mulf %14, %15 : vector<16x1xf32>
    %cst_5 = arith.constant 9.99999974E-6 : f32
    %17 = vector.broadcast %cst_5 : f32 to vector<16x1xf32>
    %18 = arith.addf %16, %17 : vector<16x1xf32>
    %19 = math.rsqrt %18 : vector<16x1xf32>
    %20 = vector.broadcast %19 : vector<16x1xf32> to vector<16x128xf32>
    %21 = arith.mulf %11, %20 : vector<16x128xf32>
    %c0_6 = arith.constant 0 : index
    %c0_7 = arith.constant 0 : index
    %22 = vector.load %arg3[%c0_6, %c0_7] : memref<1x128xf32, #tpu.memory_space<vmem>>, vector<1x128xf32>
    %23 = vector.broadcast %22 : vector<1x128xf32> to vector<16x128xf32>
    %24 = arith.mulf %21, %23 : vector<16x128xf32>
    %c0_8 = arith.constant 0 : index
    %c0_9 = arith.constant 0 : index
    %25 = vector.load %arg4[%c0_8, %c0_9] : memref<1x128xf32, #tpu.memory_space<vmem>>, vector<1x128xf32>
    %26 = vector.broadcast %25 : vector<1x128xf32> to vector<16x128xf32>
    %27 = arith.addf %24, %26 : vector<16x128xf32>
    %28 = arith.truncf %27 : vector<16x128xf32> to vector<16x128xbf16>
    %c0_10 = arith.constant 0 : index
    %c0_11 = arith.constant 0 : index
    %29 = vector.load %arg5[%c0_10, %c0_11] : memref<128x128xbf16, #tpu.memory_space<vmem>>, vector<128x128xbf16>
    %cst_12 = arith.constant dense<0.000000e+00> : vector<16x128xf32>
    %30 = tpu.matmul %28, %29, %cst_12 {dimension_numbers = #tpu.dot_dimension_numbers<[1], [0], [0], [1], [0, 0, 1, 1], [], []>} : vector<16x128xbf16>, vector<128x128xbf16>, vector<16x128xf32> -> vector<16x128xf32>
    %c0_13 = arith.constant 0 : index
    %c0_14 = arith.constant 0 : index
    %31 = vector.load %arg6[%c0_13, %c0_14] : memref<1x128xf32, #tpu.memory_space<vmem>>, vector<1x128xf32>
    %32 = vector.broadcast %31 : vector<1x128xf32> to vector<16x128xf32>
    %33 = arith.addf %30, %32 : vector<16x128xf32>
    %c0_15 = arith.constant 0 : index
    %c0_16 = arith.constant 0 : index
    %34 = vector.load %arg7[%c0_15, %c0_16] : memref<16x128xf32, #tpu.memory_space<vmem>>, vector<16x128xf32>
    tpu.vector_store %arg7[%c0_15, %c0_16], %33 {strides = array<i32>} : memref<16x128xf32, #tpu.memory_space<vmem>>, vector<16x128xf32>,
    return
  }
  func.func @transform_0(%arg0: i32, %arg1: i32) -> (i32, i32) {
    %c0_i32 = arith.constant 0 : i32
    %c0_i32_0 = arith.constant 0 : i32
    return %arg0, %c0_i32 : i32, i32
  }
  func.func @transform_1(%arg0: i32, %arg1: i32) -> (i32, i32) {
    %c0_i32 = arith.constant 0 : i32
    %c0_i32_0 = arith.constant 0 : i32
    %c0_i32_1 = arith.constant 0 : i32
    return %c0_i32, %c0_i32_0 : i32, i32
  }
  func.func @transform_2(%arg0: i32, %arg1: i32) -> (i32, i32) {
    %c0_i32 = arith.constant 0 : i32
    %c0_i32_0 = arith.constant 0 : i32
    %c0_i32_1 = arith.constant 0 : i32
    return %c0_i32, %c0_i32_0 : i32, i32
  }
  func.func @transform_3(%arg0: i32, %arg1: i32) -> (i32, i32) {
    %c0_i32 = arith.constant 0 : i32
    %c0_i32_0 = arith.constant 0 : i32
    return %c0_i32, %arg1 : i32, i32
  }
  func.func @transform_4(%arg0: i32, %arg1: i32) -> (i32, i32) {
    %c0_i32 = arith.constant 0 : i32
    %c0_i32_0 = arith.constant 0 : i32
    return %c0_i32, %arg1 : i32, i32
  }
  func.func @transform_5(%arg0: i32, %arg1: i32) -> (i32, i32) {
    %c0_i32 = arith.constant 0 : i32
    return %arg0, %arg1 : i32, i32
  }
}

</mosaic_0001>

<bundles_post_ra>
// kernel: tpu_custom_call.1
= control target key start
LH: loop header
LB: loop body
LE: loop exit
PB: predicated region body
PF: predicated region fallthrough
CT: control target
= control target key end

     0   :  { %10 = vsyncpa [#allocation3], 0  ;;  %s420_s0 = inlined_call_operand.hbm [shape: f32[16,128], index: 0, kind: input, shape index: {}]   ;;  %s421_s1 = inlined_call_operand.vmem [shape: f32[1,128], index: 1, kind: input, shape index: {}]   ;;  %s422_s2 = inlined_call_operand.vmem [shape: f32[1,128], index: 2, kind: input, shape index: {}]   ;;  %s423_s3 = inlined_call_operand.hbm [shape: bf16[128,128], index: 3, kind: input, shape index: {}]   ;;  %s424_s4 = inlined_call_operand.vmem [shape: f32[1,128], index: 4, kind: input, shape index: {}]   ;;  %s425_s5 = inlined_call_operand.hbm [shape: f32[16,128], index: 5, kind: output, shape index: {}]  }
   0x1   :  { %11 = vsyncpa [#allocation6], 0 }
   0x2   :  { %12 = vsyncpa [#allocation4], 0  ;;  %s357_s18 = smov [#allocation2]  }
   0x3   :  { %s18_s19 = sshll.u32 %s357_s18, 4  ;;  %s19_s19 = int_to_ptr.vmem [resolvable:$true] %s18_s19 }
   0x4   :  { %s299_s20 = scalar_lea.vmem %s19_s19, 256  ;;  %p304_p1 = scmp.lt.s32.totalorder %s19_s19, %s19_s19 }
   0x5   :  { %p300_p0 = scmp.ne.s32.totalorder %s19_s19, %s299_s20  ;;  %p305_p2 = scmp.lt.s32.totalorder %s299_s20, %s299_s20 }
   0x7   :  { %p306_p3 = por %p305_p2, %p304_p1 }
   0x9   :  { %p307_p4 = pnand %p306_p3, %p300_p0 }
   0xb   :  { %310 = shalt.err (!%p307_p4)
}
   0xc   :  { %s358_s21 = smov 128   ;;  %s359_s22 = smov 8  }
   0xd   :  { %24 = dma.hbm_to_vmem [thread:$0]  %s420_s0, 256, %s19_s19, [#allocation3], %s358_s21, %s358_s21, %s359_s22  }
   0xe   :  { %s360_s25 = smov [#allocation5]  }
   0xf   :  { %s34_s26 = sshll.u32 %s360_s25, 4  ;;  %s35_s26 = int_to_ptr.vmem [resolvable:$true] %s34_s26 }
  0x10   :  { %s319_s27 = scalar_lea.vmem %s35_s26, 1024  ;;  %p324_p6 = scmp.lt.s32.totalorder %s35_s26, %s35_s26 }
  0x11   :  { %p320_p5 = scmp.ne.s32.totalorder %s35_s26, %s319_s27  ;;  %p325_p7 = scmp.lt.s32.totalorder %s319_s27, %s319_s27 }
  0x13   :  { %p326_p8 = por %p325_p7, %p324_p6 }
  0x15   :  { %p327_p9 = pnand %p326_p8, %p320_p5 }
  0x17   :  { %330 = shalt.err (!%p327_p9)
}
  0x18   :  { %s361_s28 = smov 64   ;;  %s362_s29 = smov 4  }
  0x19   :  { %40 = dma.hbm_to_vmem [thread:$0]  %s423_s3, 1024, %s35_s26, [#allocation6], %s361_s28, %s361_s28, %s362_s29  }
  0x1a   :  { %351 = dma.done.wait [#allocation3], 256  }
  0x1b   :  { %352 = vsyncadd [#allocation3], 4294967040 }
  0x1c   :  { %353 = dma.done.wait [#allocation6], 1024  }
  0x1d   :  { %354 = vsyncadd [#allocation6], 4294966272  ;;  %v50_v0 = vld [vmem:[#allocation2] sm:$0xff]  ;;  %v51_v1 = vld [vmem:[#allocation2 + $0x8] sm:$0xff]  ;;  %v363_v3 = vmov 0.0   ;;  %v60_v4 = vlaneseq  ;;  %vm364_vm1 = vmmov 0  }
  0x1e   :  { %52 = vadd.xlane.f32.xlu0 %v50_v0  ;;  %v279_v2 = vld [vmem:[#allocation5 + $0x38] sm:$0xff]   ;;  %250 = vmatprep.subr.bf16.mxu0 %v363_v3  ;;  %v280_v16 = vld [vmem:[#allocation5 + $0x30] sm:$0xff]   ;;  %v281_v17 = vld [vmem:[#allocation5 + $0x28] sm:$0xff]  }
  0x1f   :  { %251 = vmatpush3.bf16.msra.mxu0 %v279_v2  ;;  %v61_v5 = vand.u32 127, %v60_v4  ;;  %v282_v18 = vld [vmem:[#allocation5 + $0x20] sm:$0xff]   ;;  %266 = vmatprep.mubr.msk.bf16.mxu0 %vm364_vm1, %v363_v3  ;;  %v283_v19 = vld [vmem:[#allocation5 + $0x18] sm:$0xff]   ;;  %v284_v20 = vld [vmem:[#allocation5 + $0x10] sm:$0xff]  }
  0x20   :  { %252 = vmatprep.subr.bf16.mxu0 %v363_v3  ;;  %v285_v21 = vld [vmem:[#allocation5 + $0x8] sm:$0xff]   ;;  %v286_v22 = vld [vmem:[#allocation5] sm:$0xff]   ;;  %v230_v31 = vld [vmem:[%s421_s1] ss:$0 sm:$0xff]  ;;  %s365_s1 = smov [#allocation7]  }
  0x21   :  { %vm62_vm0 = vcmp.lt.s32.totalorder %v61_v5, 32  ;;  %v231_v35 = vld [vmem:[%s422_s2] ss:$0 sm:$0xff]  ;;  %s217_s11 = sshll.u32 %s365_s1, 4  ;;  %s218_s11 = int_to_ptr.vmem [resolvable:$true] %s217_s11 }
  0x22   :  { %54 = vadd.xlane.f32.xlu0 %v51_v1  ;;  %v232_v40 = vld [vmem:[%s424_s4] ss:$0 sm:$0xff]  ;;  %s331_s2 = scalar_lea.vmem %s218_s11, 256  ;;  %p336_p11 = scmp.lt.s32.totalorder %s218_s11, %s218_s11 }
  0x23   :  { %253 = vmatpush3.bf16.msra.mxu0 %v280_v16  ;;  %p332_p10 = scmp.ne.s32.totalorder %s218_s11, %s331_s2  ;;  %p337_p12 = scmp.lt.s32.totalorder %s331_s2, %s331_s2 }
  0x24   :  { %254 = vmatprep.subr.bf16.mxu0 %v363_v3 }
  0x25   :  { %p338_p13 = por %p337_p12, %p336_p11 }
  0x27   :  { %255 = vmatpush3.bf16.msra.mxu0 %v281_v17  ;;  %p339_p0 = pnand %p338_p13, %p332_p10 }
  0x28   :  { %256 = vmatprep.subr.bf16.mxu0 %v363_v3 }
  0x2b   :  { %257 = vmatpush3.bf16.msra.mxu0 %v282_v18 }
  0x2c   :  { %258 = vmatprep.subr.bf16.mxu0 %v363_v3 }
  0x2f   :  { %259 = vmatpush3.bf16.msra.mxu0 %v283_v19 }
  0x30   :  { %260 = vmatprep.subr.bf16.mxu0 %v363_v3 }
  0x33   :  { %261 = vmatpush3.bf16.msra.mxu0 %v284_v20 }
  0x34   :  { %262 = vmatprep.subr.bf16.mxu0 %v363_v3 }
  0x37   :  { %263 = vmatpush3.bf16.msra.mxu0 %v285_v21 }
  0x38   :  { %264 = vmatprep.subr.bf16.mxu0 %v363_v3 }
  0x3b   :  { %265 = vmatpush3.bf16.msra.mxu0 %v286_v22 }
  0xa7   :  { %v53_v6 = vpop.xlane.xlu0 %52 }
  0xa8   :  { %v56_v7 = vmul.f32 0.03125, %v53_v6 }
  0xaa   :  { %v58_v8 = vsub.f32 %v50_v0, %v56_v7 }
  0xab   :  { %v55_v9 = vpop.xlane.xlu0 %54 }
  0xac   :  { %v57_v10 = vmul.f32 0.03125, %v55_v9  ;;  %v63_v11 = vsel %vm62_vm0, %v58_v8, 0.0 }
  0xad   :  { %v65_v12 = vmul.f32 %v63_v11, %v63_v11 }
  0xae   :  { %v59_v13 = vsub.f32 %v51_v1, %v57_v10 }
  0xaf   :  { %67 = vadd.xlane.f32.xlu1 %v65_v12 }
  0xb0   :  { %v64_v14 = vsel %vm62_vm0, %v59_v13, 0.0 }
  0xb1   :  { %v66_v15 = vmul.f32 %v64_v14, %v64_v14 }
  0xb3   :  { %69 = vadd.xlane.f32.xlu1 %v66_v15 }
 0x138   :  { %v68_v23 = vpop.xlane.xlu1 %67 }
 0x139   :  { %v71_v24 = vmul.f32 0.03125, %v68_v23 }
 0x13b   :  { %v73_v25 = vadd.f32 1e-05, %v71_v24 }
 0x13c   :  { %v70_v26 = vpop.xlane.xlu1 %69 }
 0x13d   :  { %287 = vrsqrt.f32 %v73_v25  ;;  %v72_v27 = vmul.f32 0.03125, %v70_v26 }
 0x13f   :  { %v74_v28 = vadd.f32 1e-05, %v72_v27 }
 0x141   :  { %289 = vrsqrt.f32 %v74_v28 }
 0x14a   :  { %v288_v29 = vpop.eup %287 }
 0x14b   :  { %v77_v30 = vmul.f32 %v288_v29, %v63_v11 }
 0x14d   :  { %v86_v34 = vmul.f32 %v230_v31, %v77_v30 }
 0x14e   :  { %v290_v32 = vpop.eup %289 }
 0x14f   :  { %v78_v33 = vmul.f32 %v290_v32, %v64_v14  ;;  %v95_v37 = vadd.f32 %v231_v35, %v86_v34 }
 0x151   :  { %v87_v36 = vmul.f32 %v230_v31, %v78_v33 }
 0x153   :  { %v96_v38 = vadd.f32 %v231_v35, %v87_v36 }
 0x155   :  { %v97_v39 = vpack.c.bf16 %v96_v38, %v95_v37 }
 0x157   :  { %267 = vmatmul.mubr.bf16.vlgmr.msra.gmra.mxu0 %v97_v39 }
 0x217   :  { %v203_v41 = vpop.f32.mrf.mxu0 }
 0x218   :  { %v204_v42 = vadd.f32 %v232_v40, %v203_v41 }
 0x219   :  { %v268_v43 = vpop.f32.mrf.mxu0 }
 0x21a   :  { %210 = vst [vmem:[#allocation7] sm:$0xff] %v204_v42 }
 0x21b   :  { %v206_v44 = vpop.f32.mrf.mxu0 }
 0x21c   :  { %v207_v45 = vadd.f32 %v232_v40, %v206_v44 }
 0x21d   :  { %v269_v46 = vpop.f32.mrf.mxu0 }
 0x21e   :  { %211 = vst [vmem:[#allocation7 + $0x8] sm:$0xff] %v207_v45 }
 0x21f   :  { %342 = shalt.err (!%p339_p0)
}
 0x220   :  { %223 = dma.vmem_to_hbm [thread:$0]  %s218_s11, 256, %s425_s5, [#allocation4], %s358_s21, %s358_s21, %s359_s22  }
 0x221   :  { %355 = dma.done.wait [#allocation4], 256  }
 0x222   :  { %356 = vsyncadd [#allocation4], 4294967040 }
 0x223   :  { %227 = vsyncpa [#allocation3], 1 }
 0x224   :  { %228 = vsyncpa [#allocation6], 1 }
 0x225   :  { %229 = vsyncpa [#allocation4], 1 }

</bundles_post_ra>
